<compile_context>
chip_gen: v5e
topology: v5e:2x2
jax: 0.10.0
libtpu: 0.0.40
codegen_flags: <defaults>
</compile_context>

<pallas_src>
import functools

import jax
import jax.numpy as jnp
from jax.experimental import pallas as pl
from jax.experimental.pallas import tpu as pltpu


def _outconv_kernel(x_ref, w_ref, b_ref, o_ref):
    # x_ref: (Cin, L)  VMEM   (L = hw_tile, lane-dense)
    # w_ref: (Cout, Cin) SMEM (scalars)
    # b_ref: (Cout,)     SMEM (scalars)
    # o_ref: (Cout, L) VMEM   (lane-dense output block)
    cin = x_ref.shape[0]
    cout = o_ref.shape[0]

    # Load each input-channel row once as a (1, L) lane-dense vector.
    xs = [x_ref[ci:ci + 1, :] for ci in range(cin)]

    # VPU contraction: for tiny Cin/Cout this beats pushing a K=4 matmul
    # through the MXU (avoids MXU push/pop latency and lane padding).
    # TODO(synk): for large channel counts (Cin,Cout >= ~64) an MXU jnp.dot
    # variant would be preferable; not needed for OutConv-sized channels.
    rows = []
    for co in range(cout):
        acc = xs[0] * w_ref[co, 0]
        for ci in range(1, cin):
            acc = acc + xs[ci] * w_ref[co, ci]
        rows.append(jax.nn.sigmoid(acc + b_ref[co]))

    o_ref[...] = jnp.concatenate(rows, axis=0).astype(o_ref.dtype)


def _pick_hw_tile(hw, n_batch, cin, cout):
    """Choose the spatial (lane) tile size.

    Constraints:
      * multiple of 128 (or equal to the full extent) for legal TPU tiling,
      * double-buffered x-tile + out-tile <= ~16 MiB (safe on v7x's VMEM),
      * large enough that each grid step moves a few hundred KiB of HBM,
      * leave >= ~8 grid steps when possible (v7x has 2 TensorCores).
    """
    if hw <= 128:
        return hw  # single full-extent block
    bytes_per_lane = 2 * 4 * (cin + cout)          # double-buffered f32 tiles
    cap = (16 << 20) // bytes_per_lane
    cap = max(128, min(16384, (cap // 128) * 128))
    tile = min(cap, ((hw + 127) // 128) * 128)
    while tile > 128 and n_batch * (-(-hw // tile)) < 8:
        tile = max(128, ((tile // 2) // 128) * 128)
    return tile


@jax.jit
def outconv_forward(x_nchw, weight, bias):
    """Equivalent of torch.sigmoid(nn.Conv2d(Cin, Cout, kernel_size=1)(x)).

    x_nchw: (N, Cin, H, W) float32
    weight: (Cout, Cin, 1, 1) float32   (PyTorch Conv2d weight layout)
    bias:   (Cout,) float32
    returns (N, Cout, H, W) float32
    """
    N, Cin, H, W = x_nchw.shape
    Cout = weight.shape[0]
    HW = H * W

    # Free reshapes only — no transposes, no padding copies.
    x3 = x_nchw.reshape(N, Cin, HW)
    w_mat = weight.reshape(Cout, Cin)
    b_vec = bias.reshape(Cout)

    tile = _pick_hw_tile(HW, N, Cin, Cout)
    grid = (N, pl.cdiv(HW, tile))

    out3 = pl.pallas_call(
        _outconv_kernel,
        out_shape=jax.ShapeDtypeStruct((N, Cout, HW), x_nchw.dtype),
        grid_spec=pltpu.PrefetchScalarGridSpec(
            num_scalar_prefetch=0,
            grid=grid,
            in_specs=[
                # x tile: batch dim squeezed, channels on sublanes,
                # spatial tile on lanes.
                pl.BlockSpec((None, Cin, tile), lambda n, t: (n, 0, t)),
                # tiny weight / bias live whole in SMEM (scalar reads).
                pl.BlockSpec(memory_space=pltpu.MemorySpace.SMEM),
                pl.BlockSpec(memory_space=pltpu.MemorySpace.SMEM),
            ],
            out_specs=pl.BlockSpec((None, Cout, tile), lambda n, t: (n, 0, t)),
        ),
        compiler_params=pltpu.CompilerParams(
            dimension_semantics=("parallel", "parallel")),
    )(x3, w_mat, b_vec)

    return out3.reshape(N, Cout, H, W)


if __name__ == "__main__":
    # Small shapes consistent with OutConv: batch=2, in_channels=4,
    # out_channels=3, spatial=16x16.
    N, Cin, Cout, Hh, Ww = 2, 4, 3, 16, 16

    key = jax.random.PRNGKey(0)
    kx, kw, kb = jax.random.split(key, 3)

    x = jax.random.normal(kx, (N, Cin, Hh, Ww), dtype=jnp.float32)
    # Deterministic synthetic parameters (PyTorch-shaped: (Cout, Cin, 1, 1)).
    bound = 1.0 / (Cin ** 0.5)
    weight = jax.random.uniform(kw, (Cout, Cin, 1, 1),
                                minval=-bound, maxval=bound,
                                dtype=jnp.float32)
    bias = jax.random.uniform(kb, (Cout,), minval=-bound, maxval=bound,
                              dtype=jnp.float32)

    out = outconv_forward(x, weight, bias)
    jax.block_until_ready(out)

    # Sanity check against a pure-JAX reference of the same math.
    ref = jax.nn.sigmoid(
        jnp.einsum("nchw,oc->nohw", x, weight.reshape(Cout, Cin))
        + bias[None, :, None, None])
    assert out.shape == (N, Cout, Hh, Ww)
    assert jnp.allclose(out, ref, atol=1e-5, rtol=1e-5)

    print("KERNEL_OK")
</pallas_src>

<mosaic_0001>
module attributes {stable_mosaic.version = 11 : i64} {
  func.func @_outconv_kernel(%arg0: i32, %arg1: i32, %arg2: memref<1x4x128xf32, #tpu.memory_space<vmem>>, %arg3: memref<3x4xf32, #tpu.memory_space<smem>>, %arg4: memref<3xf32, #tpu.memory_space<smem>>, %arg5: memref<1x3x128xf32, #tpu.memory_space<vmem>>) attributes {dimension_semantics = [#tpu.dimension_semantics<parallel>, #tpu.dimension_semantics<parallel>], iteration_bounds = array<i64: 2, 2>, scalar_prefetch = 0 : i64, scratch_operands = 0 : i64, tpu.core_type = #tpu.core_type<tc>, window_params = [{transform_indices = @transform_0, window_bounds = array<i64: 1, 4, 128>}, {transform_indices = @transform_1, window_bounds = array<i64: 3, 4>}, {transform_indices = @transform_2, window_bounds = array<i64: 3>}, {transform_indices = @transform_3, window_bounds = array<i64: 1, 3, 128>}]} {
    %c0 = arith.constant 0 : index
    %c0_0 = arith.constant 0 : index
    %c0_1 = arith.constant 0 : index
    %0 = vector.load %arg2[%c0, %c0_0, %c0_1] : memref<1x4x128xf32, #tpu.memory_space<vmem>>, vector<1x1x128xf32>
    %1 = vector.shape_cast %0 : vector<1x1x128xf32> to vector<1x128xf32>
    %c0_2 = arith.constant 0 : index
    %c1 = arith.constant 1 : index
    %c0_3 = arith.constant 0 : index
    %2 = vector.load %arg2[%c0_2, %c1, %c0_3] : memref<1x4x128xf32, #tpu.memory_space<vmem>>, vector<1x1x128xf32>
    %3 = vector.shape_cast %2 : vector<1x1x128xf32> to vector<1x128xf32>
    %c0_4 = arith.constant 0 : index
    %c2 = arith.constant 2 : index
    %c0_5 = arith.constant 0 : index
    %4 = vector.load %arg2[%c0_4, %c2, %c0_5] : memref<1x4x128xf32, #tpu.memory_space<vmem>>, vector<1x1x128xf32>
    %5 = vector.shape_cast %4 : vector<1x1x128xf32> to vector<1x128xf32>
    %c0_6 = arith.constant 0 : index
    %c3 = arith.constant 3 : index
    %c0_7 = arith.constant 0 : index
    %6 = vector.load %arg2[%c0_6, %c3, %c0_7] : memref<1x4x128xf32, #tpu.memory_space<vmem>>, vector<1x1x128xf32>
    %7 = vector.shape_cast %6 : vector<1x1x128xf32> to vector<1x128xf32>
    %c0_8 = arith.constant 0 : index
    %c0_9 = arith.constant 0 : index
    %8 = memref.load %arg3[%c0_8, %c0_9] : memref<3x4xf32, #tpu.memory_space<smem>>
    %9 = vector.broadcast %8 : f32 to vector<1x128xf32>
    %10 = arith.mulf %1, %9 : vector<1x128xf32>
    %c0_10 = arith.constant 0 : index
    %c1_11 = arith.constant 1 : index
    %11 = memref.load %arg3[%c0_10, %c1_11] : memref<3x4xf32, #tpu.memory_space<smem>>
    %12 = vector.broadcast %11 : f32 to vector<1x128xf32>
    %13 = arith.mulf %3, %12 : vector<1x128xf32>
    %14 = arith.addf %10, %13 : vector<1x128xf32>
    %c0_12 = arith.constant 0 : index
    %c2_13 = arith.constant 2 : index
    %15 = memref.load %arg3[%c0_12, %c2_13] : memref<3x4xf32, #tpu.memory_space<smem>>
    %16 = vector.broadcast %15 : f32 to vector<1x128xf32>
    %17 = arith.mulf %5, %16 : vector<1x128xf32>
    %18 = arith.addf %14, %17 : vector<1x128xf32>
    %c0_14 = arith.constant 0 : index
    %c3_15 = arith.constant 3 : index
    %19 = memref.load %arg3[%c0_14, %c3_15] : memref<3x4xf32, #tpu.memory_space<smem>>
    %20 = vector.broadcast %19 : f32 to vector<1x128xf32>
    %21 = arith.mulf %7, %20 : vector<1x128xf32>
    %22 = arith.addf %18, %21 : vector<1x128xf32>
    %c0_16 = arith.constant 0 : index
    %23 = memref.load %arg4[%c0_16] : memref<3xf32, #tpu.memory_space<smem>>
    %24 = vector.broadcast %23 : f32 to vector<1x128xf32>
    %25 = arith.addf %22, %24 : vector<1x128xf32>
    %26 = arith.negf %25 : vector<1x128xf32>
    %27 = math.exp %26 : vector<1x128xf32>
    %cst = arith.constant 1.000000e+00 : f32
    %28 = vector.broadcast %cst : f32 to vector<1x128xf32>
    %29 = arith.addf %28, %27 : vector<1x128xf32>
    %30 = arith.divf %28, %29 : vector<1x128xf32>
    %c1_17 = arith.constant 1 : index
    %c0_18 = arith.constant 0 : index
    %31 = memref.load %arg3[%c1_17, %c0_18] : memref<3x4xf32, #tpu.memory_space<smem>>
    %32 = vector.broadcast %31 : f32 to vector<1x128xf32>
    %33 = arith.mulf %1, %32 : vector<1x128xf32>
    %c1_19 = arith.constant 1 : index
    %c1_20 = arith.constant 1 : index
    %34 = memref.load %arg3[%c1_19, %c1_20] : memref<3x4xf32, #tpu.memory_space<smem>>
    %35 = vector.broadcast %34 : f32 to vector<1x128xf32>
    %36 = arith.mulf %3, %35 : vector<1x128xf32>
    %37 = arith.addf %33, %36 : vector<1x128xf32>
    %c1_21 = arith.constant 1 : index
    %c2_22 = arith.constant 2 : index
    %38 = memref.load %arg3[%c1_21, %c2_22] : memref<3x4xf32, #tpu.memory_space<smem>>
    %39 = vector.broadcast %38 : f32 to vector<1x128xf32>
    %40 = arith.mulf %5, %39 : vector<1x128xf32>
    %41 = arith.addf %37, %40 : vector<1x128xf32>
    %c1_23 = arith.constant 1 : index
    %c3_24 = arith.constant 3 : index
    %42 = memref.load %arg3[%c1_23, %c3_24] : memref<3x4xf32, #tpu.memory_space<smem>>
    %43 = vector.broadcast %42 : f32 to vector<1x128xf32>
    %44 = arith.mulf %7, %43 : vector<1x128xf32>
    %45 = arith.addf %41, %44 : vector<1x128xf32>
    %c1_25 = arith.constant 1 : index
    %46 = memref.load %arg4[%c1_25] : memref<3xf32, #tpu.memory_space<smem>>
    %47 = vector.broadcast %46 : f32 to vector<1x128xf32>
    %48 = arith.addf %45, %47 : vector<1x128xf32>
    %49 = arith.negf %48 : vector<1x128xf32>
    %50 = math.exp %49 : vector<1x128xf32>
    %cst_26 = arith.constant 1.000000e+00 : f32
    %51 = vector.broadcast %cst_26 : f32 to vector<1x128xf32>
    %52 = arith.addf %51, %50 : vector<1x128xf32>
    %53 = arith.divf %51, %52 : vector<1x128xf32>
    %c2_27 = arith.constant 2 : index
    %c0_28 = arith.constant 0 : index
    %54 = memref.load %arg3[%c2_27, %c0_28] : memref<3x4xf32, #tpu.memory_space<smem>>
    %55 = vector.broadcast %54 : f32 to vector<1x128xf32>
    %56 = arith.mulf %1, %55 : vector<1x128xf32>
    %c2_29 = arith.constant 2 : index
    %c1_30 = arith.constant 1 : index
    %57 = memref.load %arg3[%c2_29, %c1_30] : memref<3x4xf32, #tpu.memory_space<smem>>
    %58 = vector.broadcast %57 : f32 to vector<1x128xf32>
    %59 = arith.mulf %3, %58 : vector<1x128xf32>
    %60 = arith.addf %56, %59 : vector<1x128xf32>
    %c2_31 = arith.constant 2 : index
    %c2_32 = arith.constant 2 : index
    %61 = memref.load %arg3[%c2_31, %c2_32] : memref<3x4xf32, #tpu.memory_space<smem>>
    %62 = vector.broadcast %61 : f32 to vector<1x128xf32>
    %63 = arith.mulf %5, %62 : vector<1x128xf32>
    %64 = arith.addf %60, %63 : vector<1x128xf32>
    %c2_33 = arith.constant 2 : index
    %c3_34 = arith.constant 3 : index
    %65 = memref.load %arg3[%c2_33, %c3_34] : memref<3x4xf32, #tpu.memory_space<smem>>
    %66 = vector.broadcast %65 : f32 to vector<1x128xf32>
    %67 = arith.mulf %7, %66 : vector<1x128xf32>
    %68 = arith.addf %64, %67 : vector<1x128xf32>
    %c2_35 = arith.constant 2 : index
    %69 = memref.load %arg4[%c2_35] : memref<3xf32, #tpu.memory_space<smem>>
    %70 = vector.broadcast %69 : f32 to vector<1x128xf32>
    %71 = arith.addf %68, %70 : vector<1x128xf32>
    %72 = arith.negf %71 : vector<1x128xf32>
    %73 = math.exp %72 : vector<1x128xf32>
    %cst_36 = arith.constant 1.000000e+00 : f32
    %74 = vector.broadcast %cst_36 : f32 to vector<1x128xf32>
    %75 = arith.addf %74, %73 : vector<1x128xf32>
    %76 = arith.divf %74, %75 : vector<1x128xf32>
    %77 = tpu.concatenate %30, %53, %76 in 0 : vector<1x128xf32>, vector<1x128xf32>, vector<1x128xf32> -> vector<3x128xf32>
    %c0_37 = arith.constant 0 : index
    %c0_38 = arith.constant 0 : index
    %c0_39 = arith.constant 0 : index
    %78 = vector.load %arg5[%c0_37, %c0_38, %c0_39] : memref<1x3x128xf32, #tpu.memory_space<vmem>>, vector<1x3x128xf32>
    %79 = vector.shape_cast %78 : vector<1x3x128xf32> to vector<3x128xf32>
    %80 = vector.shape_cast %77 : vector<3x128xf32> to vector<1x3x128xf32>
    tpu.vector_store %arg5[%c0_37, %c0_38, %c0_39], %80 {strides = array<i32>} : memref<1x3x128xf32, #tpu.memory_space<vmem>>, vector<1x3x128xf32>,
    return
  }
  func.func @transform_0(%arg0: i32, %arg1: i32) -> (i32, i32, i32) {
    %c0_i32 = arith.constant 0 : i32
    %c0_i32_0 = arith.constant 0 : i32
    return %arg0, %c0_i32, %arg1 : i32, i32, i32
  }
  func.func @transform_1(%arg0: i32, %arg1: i32) -> (i32, i32) {
    %c0_i32 = arith.constant 0 : i32
    %c0_i32_0 = arith.constant 0 : i32
    %c0_i32_1 = arith.constant 0 : i32
    return %c0_i32, %c0_i32_0 : i32, i32
  }
  func.func @transform_2(%arg0: i32, %arg1: i32) -> i32 {
    %c0_i32 = arith.constant 0 : i32
    %c0_i32_0 = arith.constant 0 : i32
    return %c0_i32 : i32
  }
  func.func @transform_3(%arg0: i32, %arg1: i32) -> (i32, i32, i32) {
    %c0_i32 = arith.constant 0 : i32
    %c0_i32_0 = arith.constant 0 : i32
    return %arg0, %c0_i32, %arg1 : i32, i32, i32
  }
}

</mosaic_0001>

<bundles_post_ra>
// kernel: outconv_forward.1
= control target key start
LH: loop header
LB: loop body
LE: loop exit
PB: predicated region body
PF: predicated region fallthrough
CT: control target
= control target key end

     0   :  { %8 = vsyncpa [#allocation3], 0  ;;  %s772_s0 = inlined_call_operand.vmem [shape: f32[2,4,256], index: 0, kind: input, shape index: {}]   ;;  %s773_s1 = inlined_call_operand.vmem [shape: f32[3,4], index: 1, kind: input, shape index: {}]   ;;  %s774_s2 = inlined_call_operand.vmem [shape: f32[3], index: 2, kind: input, shape index: {}]   ;;  %s775_s3 = inlined_call_operand.vmem [shape: f32[2,3,256], index: 3, kind: output, shape index: {}]  }
   0x1   :  { %9 = vsyncpa [#allocation5], 0  ;;  %s668_s12 = smov 0   ;;  %s670_s13 = smov 0  }
   0x2   :  { %s672_s14 = smov 0   ;;  %s674_s15 = smov 0  }
   0x3   :  { %s676_s16 = smov 0  }
   0x4 LB: > { %s464_s17 = sadd.s32 4294967295, %s644_s16   ;;  %s24_s18 = sadd.s32 1, %s636_s14  ;;  %s644_s16 = sphi %s676_s16, %s15_s16   ;;  %s640_s15 = sphi %s674_s15, %s783_s15   ;;  %s636_s14 = sphi %s672_s14, %s782_s14   ;;  %s632_s13 = sphi %s670_s13, %s781_s13   ;;  %s628_s12 = sphi %s668_s12, %s780_s12  }
   0x5   : > { %p25_p0 = scmp.ge.s32.totalorder %s24_s18, 2  ;;  %s27_s19 = sadd.s32 1, %s640_s15 }
   0x6   : > { %p466_p1 = scmp.ge.s32.totalorder %s644_s16, 1  ;;  %p130_p2 = scmp.lt.s32.totalorder %s644_s16, 5 }
   0x7   : > { %s785_s18 = smov (%p25_p0, %s24_s18), 0  ;;  %s787_s19 = smov (!%p25_p0, %s27_s19), %s640_s15 }
   0x8   : > { %p701_p3 = pnand %p466_p1, %p130_p2  ;;  %p29_p4 = scmp.ge.s32.totalorder %s787_s19, 2 }
   0x9   : > { %p705_p5 = scmp.eq.s32.totalorder %s464_s17, 0  ;;  %s142_s24 = sshll.u32 %s773_s1, 4  ;;  %s143_s24 = int_to_ptr.vmem [resolvable:$true] %s142_s24 }
   0xa   : > { %p503_p6 = pneg %p701_p3  ;;  %s789_s19 = smov (%p29_p4, %s787_s19), 0 }
   0xb   : > { %s152_s27 = sshll.u32 %s774_s2, 4  ;;  %s646_s28 = smov [#allocation2]   ;;  %s153_s27 = int_to_ptr.vmem [resolvable:$true] %s152_s27 }
   0xc   : > { %p504_p7 = pnand %p705_p5, %p503_p6  ;;  %s647_s29 = smov [#allocation4]  }
   0xd   : > { %176 = sbr.rel (%p701_p3) target bundleno = 85 (0x55), region = 32 }
   0xe   : > { %506 = dma.vmem_to_smem (!%p504_p7), %s143_s24, 64, %s646_s28, [#allocation3]  }
   0xf   : > { %509 = dma.vmem_to_smem (!%p504_p7), %s153_s27, 16, %s647_s29, [#allocation5]  }
  0x12   : > { %619 = dma.done.wait (%p705_p5), [#allocation3], 64  }
  0x13   : > { %621 = vsyncadd (%p705_p5), [#allocation3], 4294967232 }
  0x14   : > { %623 = dma.done.wait (%p705_p5), [#allocation5], 16  }
  0x15   : > { %625 = vsyncadd (%p705_p5), [#allocation5], 4294967280 }
  0x16   : > { %188 = sfence }
  0x17   : > { %p213_p8 = scmp.lt.s32.totalorder %s632_s13, 1  ;;  %p215_p9 = scmp.lt.s32.totalorder %s628_s12, 1  ;;  %vm350_vm12 = vcmask 1040384   ;;  %vm352_vm13 = vcmask 1041408  }
  0x18   : > { %s233_s30 = sld [smem:[#allocation2]] }
  0x19   : > { %s791_s13 = smov (!%p213_p8, %s632_s13), 1  ;;  %s793_s12 = smov (!%p215_p9, %s628_s12), 1 }
  0x1a   : > { %s473_s4 = sshll.u32 %s791_s13, 1  ;;  %s477_s5 = sld [smem:[#allocation2 + $0x1]] }
  0x1b   : > { %s735_s6 = sadd.s32 %s473_s4, %s793_s12  ;;  %s478_s7 = sld [smem:[#allocation2 + $0x2]] }
  0x1c   : > { %s474_s8 = sshll.u32 %s735_s6, 2  ;;  %s479_s9 = sld [smem:[#allocation2 + $0x3]] }
  0x1d   : > { %s220_s17 = scalar_lea.vmem %s772_s0, %s474_s8  ;;  %s248_s20 = sld [smem:[#allocation4]] }
  0x1e   : > { %v234_v0 = vstv %s233_s30  ;;  %v229_v1 = vld [vmem:[%s220_s17] sm:$0x1]  ;;  %v230_v3 = vld [vmem:[%s220_s17 + $0x1] sm:$0x1]  ;;  %s481_s13 = sld [smem:[#allocation2 + $0x80]]  ;;  %s228_s4 = scalar_lea.vmem %s775_s3, %s474_s8 }
  0x1f   : > { %v235_v2 = vmul.f32 %v234_v0, %v229_v1  ;;  %v231_v5 = vld [vmem:[%s220_s17 + $0x2] sm:$0x1]  ;;  %s482_s12 = sld [smem:[#allocation2 + $0x81]]  ;;  %v232_v8 = vld [vmem:[%s220_s17 + $0x3] sm:$0x1] }
  0x20   : > { %v237_v4 = vstv %s477_s5  ;;  %s483_s21 = sld [smem:[#allocation2 + $0x82]] }
  0x21   : > { %v238_v6 = vmul.f32 %v237_v4, %v230_v3  ;;  %v241_v7 = vstv %s478_s7  ;;  %s484_s22 = sld [smem:[#allocation2 + $0x83]] }
  0x22   : > { %v242_v9 = vmul.f32 %v241_v7, %v231_v5  ;;  %v245_v10 = vstv %s479_s9  ;;  %s743_s23 = sld [smem:[#allocation4 + $0x1]] }
  0x23   : > { %v239_v11 = vadd.f32 %v238_v6, %v235_v2  ;;  %v246_v12 = vmul.f32 %v245_v10, %v232_v8  ;;  %s487_s24 = sld [smem:[#allocation2 + $0x100]]  ;;  %v249_v14 = vstv %s248_s20 }
  0x24   : > { %v271_v15 = vstv %s481_s13  ;;  %s488_s25 = sld [smem:[#allocation2 + $0x101]] }
  0x25   : > { %v243_v13 = vadd.f32 %v242_v9, %v239_v11  ;;  %v272_v17 = vmul.f32 %v271_v15, %v229_v1  ;;  %v274_v18 = vstv %s482_s12  ;;  %s489_s26 = sld [smem:[#allocation2 + $0x102]] }
  0x26   : > { %v275_v19 = vmul.f32 %v274_v18, %v230_v3  ;;  %v278_v20 = vstv %s483_s21  ;;  %s490_s27 = sld [smem:[#allocation2 + $0x103]] }
  0x27   : > { %v247_v16 = vadd.f32 %v246_v12, %v243_v13  ;;  %v279_v22 = vmul.f32 %v278_v20, %v231_v5  ;;  %v282_v23 = vstv %s484_s22  ;;  %s491_s28 = sld [smem:[#allocation4 + $0x2]] }
  0x28   : > { %v276_v24 = vadd.f32 %v275_v19, %v272_v17  ;;  %v283_v25 = vmul.f32 %v282_v23, %v232_v8  ;;  %v286_v31 = vstv %s743_s23 }
  0x29   : > { %v250_v21 = vadd.f32 %v249_v14, %v247_v16  ;;  %v308_v27 = vstv %s487_s24 }
  0x2a   : > { %v280_v28 = vadd.f32 %v279_v22, %v276_v24  ;;  %v309_v29 = vmul.f32 %v308_v27, %v229_v1  ;;  %v311_v30 = vstv %s488_s25 }
  0x2b   : > { %v480_v26 = vmul.f32 -1.442695, %v250_v21  ;;  %v312_v32 = vmul.f32 %v311_v30, %v230_v3  ;;  %v315_v33 = vstv %s489_s26 }
  0x2c   : > { %v284_v34 = vadd.f32 %v283_v25, %v280_v28  ;;  %v316_v35 = vmul.f32 %v315_v33, %v231_v5  ;;  %v319_v36 = vstv %s490_s27 }
  0x2d   : > { %556 = vpow2.f32 %v480_v26  ;;  %v313_v37 = vadd.f32 %v312_v32, %v309_v29  ;;  %v320_v38 = vmul.f32 %v319_v36, %v232_v8  ;;  %v323_v42 = vstv %s491_s28 }
  0x2e   : > { %v287_v39 = vadd.f32 %v286_v31, %v284_v34 }
  0x2f   : > { %v317_v40 = vadd.f32 %v316_v35, %v313_v37 }
  0x30   : > { %v486_v41 = vmul.f32 -1.442695, %v287_v39 }
  0x31   : > { %v321_v44 = vadd.f32 %v320_v38, %v317_v40 }
  0x32   : > { %558 = vpow2.f32 %v486_v41 }
  0x33   : > { %v557_v43 = vpop.eup %556  ;;  %v324_v46 = vadd.f32 %v323_v42, %v321_v44 }
  0x34   : > { %v254_v45 = vadd.f32 1.0, %v557_v43 }
  0x35   : > { %v492_v47 = vmul.f32 -1.442695, %v324_v46 }
  0x36   : > { %560 = vrcp.f32 %v254_v45  ;;  %vm260_vm0 = vweird.f32 %v254_v45  ;;  %v266_v58 = vand.u32 2147483648, %v254_v45  ;;  %v264_v1 = vand.u32 2147483647, %v254_v45 }
  0x37   : > { %562 = vpow2.f32 %v492_v47 }
  0x38   : > { %v559_v48 = vpop.eup %558  ;;  %v267_v5 = vor.u32 1.1754944e-38, %v266_v58  ;;  %vm265_vm9 = vcmp.eq.f32.partialorder %v264_v1, 8.507059e+37 }
  0x39   : > { %v291_v49 = vadd.f32 1.0, %v559_v48 }
  0x3b   : > { %564 = vrcp.f32 %v291_v49  ;;  %v303_v59 = vand.u32 2147483648, %v291_v49  ;;  %vm297_vm2 = vweird.f32 %v291_v49  ;;  %v301_v61 = vand.u32 2147483647, %v291_v49 }
  0x3c   : > { %v561_v50 = vpop.eup %560 }
  0x3d   : > { %v256_v51 = vmul.f32 %v561_v50, %v254_v45  ;;  %v563_v52 = vpop.eup %562  ;;  %vm261_vm1 = vweird.f32 %v561_v50  ;;  %v304_v3 = vor.u32 1.1754944e-38, %v303_v59  ;;  %vm302_vm6 = vcmp.eq.f32.partialorder %v301_v61, 8.507059e+37 }
  0x3e   : > { %v328_v54 = vadd.f32 1.0, %v563_v52  ;;  %vm746_vm4 = vmor %vm260_vm0, %vm261_vm1 }
  0x3f   : > { %v257_v53 = vsub.f32 1.0, %v256_v51 }
  0x40   : > { %566 = vrcp.f32 %v328_v54  ;;  %v340_v7 = vand.u32 2147483648, %v328_v54  ;;  %vm334_vm7 = vweird.f32 %v328_v54  ;;  %v338_v9 = vand.u32 2147483647, %v328_v54 }
  0x41   : > { %v565_v55 = vpop.eup %564  ;;  %v258_v56 = vmul.f32 %v561_v50, %v257_v53 }
  0x42   : > { %v293_v57 = vmul.f32 %v565_v55, %v291_v49  ;;  %vm298_vm3 = vweird.f32 %v565_v55  ;;  %v341_v14 = vor.u32 1.1754944e-38, %v340_v7  ;;  %vm339_vm11 = vcmp.eq.f32.partialorder %v338_v9, 8.507059e+37 }
  0x43   : > { %v259_v63 = vadd.f32 %v561_v50, %v258_v56  ;;  %vm299_vm5 = vmor %vm297_vm2, %vm298_vm3 }
  0x44   : > { %v294_v60 = vsub.f32 1.0, %v293_v57 }
  0x45   : > { %v263_v10 = vsel %vm746_vm4, %v561_v50, %v259_v63 }
  0x46   : > { %v567_v62 = vpop.eup %566  ;;  %v295_v2 = vmul.f32 %v565_v55, %v294_v60  ;;  %v268_v16 = vsel %vm265_vm9, %v267_v5, %v263_v10 }
  0x47   : > { %v330_v4 = vmul.f32 %v567_v62, %v328_v54  ;;  %vm335_vm8 = vweird.f32 %v567_v62 }
  0x48   : > { %v296_v6 = vadd.f32 %v565_v55, %v295_v2  ;;  %vm336_vm10 = vmor %vm334_vm7, %vm335_vm8 }
  0x49   : > { %v331_v8 = vsub.f32 1.0, %v330_v4 }
  0x4a   : > { %v300_v11 = vsel %vm299_vm5, %v565_v55, %v296_v6 }
  0x4b   : > { %v305_v12 = vsel %vm302_vm6, %v304_v3, %v300_v11  ;;  %v332_v13 = vmul.f32 %v567_v62, %v331_v8 }
  0x4c   : > { %v345_v15 = vrot.slane %v305_v12, 7 }
  0x4d   : > { %v333_v17 = vadd.f32 %v567_v62, %v332_v13 }
  0x4e   : > { %v351_v20 = vsel %vm350_vm12, %v268_v16, %v345_v15 }
  0x4f   : > { %v337_v18 = vsel %vm336_vm10, %v567_v62, %v333_v17 }
  0x50   : > { %v342_v19 = vsel %vm339_vm11, %v341_v14, %v337_v18 }
  0x51   : > { %v348_v21 = vrot.slane %v342_v19, 6 }
  0x53   : > { %v353_v22 = vsel %vm352_vm13, %v351_v20, %v348_v21 }
  0x54   : > { %354 = vst [vmem:[%s228_s4] sm:$0x7] %v353_v22 }
  0x55 PF: > { %s15_s16 = sadd.s32 1, %s644_s16   ;;  %s780_s12 = smov %s636_s14 }
  0x56   : > { %p12_p10 = scmp.ge.s32.totalorder %s15_s16, 6   ;;  %s781_s13 = smov %s640_s15 }
  0x57   : > { %s782_s14 = smov %s785_s18  ;;  %s783_s15 = smov %s789_s19 }
  0x58   :  { %14 = sbr.rel (!%p12_p10) target bundleno = 4 (0x4), region = 71 }
  0x5d   :  { %382 = vsyncpa [#allocation3], 1 }
  0x5e   :  { %384 = vsyncpa [#allocation3 + $0x1], 1 }
  0x5f   :  { %385 = vsyncpa [#allocation5], 1 }

</bundles_post_ra>
